<compile_context>
chip_gen: v7x
topology: tpu7x:2x2x1
jax: 0.10.0
libtpu: 0.0.40
codegen_flags: <defaults>
</compile_context>

<pallas_src>
import functools

import jax
import jax.numpy as jnp
from jax.experimental import pallas as pl
from jax.experimental.pallas import tpu as pltpu

_EPS = 1e-5


def _ln_kernel_simple(x_ref, w_ref, o_ref, *, c):
    """Rows laid out as (tm, C); normalize each row over the last axis."""
    x = x_ref[...].astype(jnp.float32)
    inv_c = 1.0 / c
    mean = jnp.sum(x, axis=-1, keepdims=True) * inv_c
    cent = x - mean
    var = jnp.sum(cent * cent, axis=-1, keepdims=True) * inv_c   # unbiased=False
    inv = jax.lax.rsqrt(var + _EPS)
    w = w_ref[...].astype(jnp.float32)            # (1, C) broadcasts over rows
    o_ref[...] = (x * inv * w).astype(o_ref.dtype)


def _ln_kernel_folded(x_ref, w_ref, g_ref, gt_ref, o_ref, *, c):
    """k original rows folded into each lane-dense row of width k*C.

    Per-original-row (group) sums / broadcasts go through tiny MXU matmuls against a
    block-diagonal indicator matrix, so the kernel never materializes a lane-sparse
    (tm, k, C) intermediate and all output stores are full-lane (unmasked).
    """
    x = x_ref[...].astype(jnp.float32)            # (tm, k*C)
    g = g_ref[...]                                 # (k*C, k) group indicator
    gt = gt_ref[...]                               # (k, k*C) = g.T
    w = w_ref[...].astype(jnp.float32)             # (1, k*C) weight tiled k times
    inv_c = 1.0 / c

    mean = jnp.dot(x, g, preferred_element_type=jnp.float32) * inv_c      # (tm, k)
    mean_e = jnp.dot(mean, gt, preferred_element_type=jnp.float32)        # (tm, k*C)
    cent = x - mean_e
    var = jnp.dot(cent * cent, g, preferred_element_type=jnp.float32) * inv_c
    inv = jax.lax.rsqrt(var + _EPS)                                        # (tm, k)
    inv_e = jnp.dot(inv, gt, preferred_element_type=jnp.float32)          # (tm, k*C)
    o_ref[...] = (x * inv_e * w).astype(o_ref.dtype)


def biasfree_layernorm(x, weight, *, target_block_bytes=2 * 1024 * 1024):
    """x: (..., C), weight: (C,). Returns same shape/dtype as x."""
    orig_shape = x.shape
    C = orig_shape[-1]
    assert weight.shape == (C,)

    x2d = x.reshape(-1, C)
    R = x2d.shape[0]

    # ---- lane density: fold k consecutive rows into one 128-wide row when C < 128 ----
    k = 1
    if C < 128 and (128 % C == 0):
        kk = 128 // C
        if R % kk == 0 and R // kk >= 1:
            k = kk
    kc = k * C
    Rf = R // k
    x_in = x2d.reshape(Rf, kc) if k > 1 else x2d

    # ---- row-tile sizing: ~2 MiB of f32-equivalent per block, >= 2 grid steps ----
    target_rows = max(1, (target_block_bytes // 4) // kc)
    if Rf < 8:
        tm = Rf                                   # full-extent block (tiny input)
    else:
        tm = min(target_rows, pl.cdiv(Rf, 2))     # keep >= 2 steps for v7x's 2 TCs
        tm = max(8, (tm // 8) * 8)                # sublane-friendly
    grid = (pl.cdiv(Rf, tm),)                     # ragged last block: reads padded, writes masked

    w_in = (jnp.tile(weight, k) if k > 1 else weight).reshape(1, kc)

    compiler_params = pltpu.CompilerParams(
        dimension_semantics=("parallel",),
        vmem_limit_bytes=48 * 1024 * 1024,        # above 16/32 MiB defaults, under v7x's 64 MiB
    )

    if k > 1:
        # Block-diagonal group-indicator matrix for MXU segment sums / broadcasts.
        gmat = ((jnp.arange(kc)[:, None] // C) == jnp.arange(k)[None, :]).astype(jnp.float32)
        gtmat = gmat.T
        kernel = functools.partial(_ln_kernel_folded, c=C)
        in_specs = [
            pl.BlockSpec((tm, kc), lambda i: (i, 0)),
            pl.BlockSpec((1, kc), lambda i: (0, 0)),
            pl.BlockSpec((kc, k), lambda i: (0, 0)),
            pl.BlockSpec((k, kc), lambda i: (0, 0)),
        ]
        operands = (x_in, w_in, gmat, gtmat)
    else:
        kernel = functools.partial(_ln_kernel_simple, c=C)
        in_specs = [
            pl.BlockSpec((tm, C), lambda i: (i, 0)),
            pl.BlockSpec((1, C), lambda i: (0, 0)),
        ]
        operands = (x_in, w_in)

    out = pl.pallas_call(
        kernel,
        out_shape=jax.ShapeDtypeStruct((Rf, kc), x.dtype),
        grid_spec=pltpu.PrefetchScalarGridSpec(
            num_scalar_prefetch=0,
            grid=grid,
            in_specs=in_specs,
            out_specs=pl.BlockSpec((tm, kc), lambda i: (i, 0)),
        ),
        compiler_params=compiler_params,
    )(*operands)

    return out.reshape(orig_shape)


def _reference(x, weight):
    sigma = jnp.var(x, axis=-1, keepdims=True)    # biased (unbiased=False)
    return x / jnp.sqrt(sigma + _EPS) * weight


if __name__ == "__main__":
    key = jax.random.PRNGKey(0)

    # Main case (folded, lane-dense path): C=32 < 128, k=4 -> 128-wide rows.
    B, N, C = 2, 64, 32
    x = jax.random.normal(key, (B, N, C), dtype=jnp.float32)
    weight = jnp.ones((C,), dtype=jnp.float32)    # nn.Parameter(torch.ones(C))

    out = biasfree_layernorm(x, weight)
    out = jax.block_until_ready(out)
    assert jnp.allclose(out, _reference(x, weight), atol=1e-5, rtol=1e-5), "mismatch (folded path)"

    # Second case exercises the simple path + ragged last row-block (C=48 not foldable).
    key2 = jax.random.PRNGKey(1)
    x2 = jax.random.normal(key2, (2, 10, 48), dtype=jnp.float32)
    w2 = jnp.ones((48,), dtype=jnp.float32)
    out2 = jax.block_until_ready(biasfree_layernorm(x2, w2))
    assert jnp.allclose(out2, _reference(x2, w2), atol=1e-5, rtol=1e-5), "mismatch (simple path)"

    print("KERNEL_OK")
</pallas_src>

<mosaic_0001>
module attributes {stable_mosaic.version = 11 : i64} {
  func.func @_ln_kernel_folded(%arg0: i32, %arg1: memref<16x128xf32, #tpu.memory_space<vmem>>, %arg2: memref<1x128xf32, #tpu.memory_space<vmem>>, %arg3: memref<128x4xf32, #tpu.memory_space<vmem>>, %arg4: memref<4x128xf32, #tpu.memory_space<vmem>>, %arg5: memref<16x128xf32, #tpu.memory_space<vmem>>) attributes {dimension_semantics = [#tpu.dimension_semantics<parallel>], iteration_bounds = array<i64: 2>, scalar_prefetch = 0 : i64, scratch_operands = 0 : i64, tpu.core_type = #tpu.core_type<tc>, window_params = [{transform_indices = @transform_0, window_bounds = array<i64: 16, 128>}, {pipeline_mode = #tpu.pipeline_mode<synchronous>, transform_indices = @transform_1, window_bounds = array<i64: 1, 128>}, {pipeline_mode = #tpu.pipeline_mode<synchronous>, transform_indices = @transform_2, window_bounds = array<i64: 128, 4>}, {pipeline_mode = #tpu.pipeline_mode<synchronous>, transform_indices = @transform_3, window_bounds = array<i64: 4, 128>}, {transform_indices = @transform_4, window_bounds = array<i64: 16, 128>}]} {
    %c0 = arith.constant 0 : index
    %c0_0 = arith.constant 0 : index
    %0 = vector.load %arg1[%c0, %c0_0] : memref<16x128xf32, #tpu.memory_space<vmem>>, vector<16x128xf32>
    %c0_1 = arith.constant 0 : index
    %c0_2 = arith.constant 0 : index
    %1 = vector.load %arg3[%c0_1, %c0_2] : memref<128x4xf32, #tpu.memory_space<vmem>>, vector<128x4xf32>
    %c0_3 = arith.constant 0 : index
    %c0_4 = arith.constant 0 : index
    %2 = vector.load %arg4[%c0_3, %c0_4] : memref<4x128xf32, #tpu.memory_space<vmem>>, vector<4x128xf32>
    %c0_5 = arith.constant 0 : index
    %c0_6 = arith.constant 0 : index
    %3 = vector.load %arg2[%c0_5, %c0_6] : memref<1x128xf32, #tpu.memory_space<vmem>>, vector<1x128xf32>
    %cst = arith.constant dense<0.000000e+00> : vector<16x4xf32>
    %4 = tpu.matmul %0, %1, %cst {dimension_numbers = #tpu.dot_dimension_numbers<[1], [0], [0], [1], [0, 0, 1, 1], [], []>} : vector<16x128xf32>, vector<128x4xf32>, vector<16x4xf32> -> vector<16x4xf32>
    %cst_7 = arith.constant 3.125000e-02 : f32
    %5 = vector.broadcast %cst_7 : f32 to vector<16x4xf32>
    %6 = arith.mulf %4, %5 : vector<16x4xf32>
    %cst_8 = arith.constant dense<0.000000e+00> : vector<16x128xf32>
    %7 = tpu.matmul %6, %2, %cst_8 {dimension_numbers = #tpu.dot_dimension_numbers<[1], [0], [0], [1], [0, 0, 1, 1], [], []>} : vector<16x4xf32>, vector<4x128xf32>, vector<16x128xf32> -> vector<16x128xf32>
    %8 = arith.subf %0, %7 : vector<16x128xf32>
    %9 = arith.mulf %8, %8 : vector<16x128xf32>
    %cst_9 = arith.constant dense<0.000000e+00> : vector<16x4xf32>
    %10 = tpu.matmul %9, %1, %cst_9 {dimension_numbers = #tpu.dot_dimension_numbers<[1], [0], [0], [1], [0, 0, 1, 1], [], []>} : vector<16x128xf32>, vector<128x4xf32>, vector<16x4xf32> -> vector<16x4xf32>
    %cst_10 = arith.constant 3.125000e-02 : f32
    %11 = vector.broadcast %cst_10 : f32 to vector<16x4xf32>
    %12 = arith.mulf %10, %11 : vector<16x4xf32>
    %cst_11 = arith.constant 9.99999974E-6 : f32
    %13 = vector.broadcast %cst_11 : f32 to vector<16x4xf32>
    %14 = arith.addf %12, %13 : vector<16x4xf32>
    %15 = math.rsqrt %14 : vector<16x4xf32>
    %cst_12 = arith.constant dense<0.000000e+00> : vector<16x128xf32>
    %16 = tpu.matmul %15, %2, %cst_12 {dimension_numbers = #tpu.dot_dimension_numbers<[1], [0], [0], [1], [0, 0, 1, 1], [], []>} : vector<16x4xf32>, vector<4x128xf32>, vector<16x128xf32> -> vector<16x128xf32>
    %17 = arith.mulf %0, %16 : vector<16x128xf32>
    %18 = vector.broadcast %3 : vector<1x128xf32> to vector<16x128xf32>
    %19 = arith.mulf %17, %18 : vector<16x128xf32>
    %c0_13 = arith.constant 0 : index
    %c0_14 = arith.constant 0 : index
    %20 = vector.load %arg5[%c0_13, %c0_14] : memref<16x128xf32, #tpu.memory_space<vmem>>, vector<16x128xf32>
    tpu.vector_store %arg5[%c0_13, %c0_14], %19 {strides = array<i32>} : memref<16x128xf32, #tpu.memory_space<vmem>>, vector<16x128xf32>,
    return
  }
  func.func @transform_0(%arg0: i32) -> (i32, i32) {
    %c0_i32 = arith.constant 0 : i32
    %c0_i32_0 = arith.constant 0 : i32
    return %arg0, %c0_i32 : i32, i32
  }
  func.func @transform_1(%arg0: i32) -> (i32, i32) {
    %c0_i32 = arith.constant 0 : i32
    %c0_i32_0 = arith.constant 0 : i32
    %c0_i32_1 = arith.constant 0 : i32
    return %c0_i32, %c0_i32_0 : i32, i32
  }
  func.func @transform_2(%arg0: i32) -> (i32, i32) {
    %c0_i32 = arith.constant 0 : i32
    %c0_i32_0 = arith.constant 0 : i32
    %c0_i32_1 = arith.constant 0 : i32
    return %c0_i32, %c0_i32_0 : i32, i32
  }
  func.func @transform_3(%arg0: i32) -> (i32, i32) {
    %c0_i32 = arith.constant 0 : i32
    %c0_i32_0 = arith.constant 0 : i32
    %c0_i32_1 = arith.constant 0 : i32
    return %c0_i32, %c0_i32_0 : i32, i32
  }
  func.func @transform_4(%arg0: i32) -> (i32, i32) {
    %c0_i32 = arith.constant 0 : i32
    %c0_i32_0 = arith.constant 0 : i32
    return %arg0, %c0_i32 : i32, i32
  }
}

</mosaic_0001>

<bundles_post_ra>
// kernel: tpu_custom_call.1
= control target key start
LH: loop header
LB: loop body
LE: loop exit
PB: predicated region body
PF: predicated region fallthrough
CT: control target
= control target key end

     0   :  { %9 = vsyncpa [#allocation3], 0  ;;  %s1144_s0 = inlined_call_operand.vmem [shape: f32[32,128], index: 0, kind: input, shape index: {}]   ;;  %s1145_s1 = inlined_call_operand.vmem [shape: f32[1,128], index: 1, kind: input, shape index: {}]   ;;  %s1146_s2 = inlined_call_operand.vmem [shape: f32[128,4], index: 2, kind: input, shape index: {}]   ;;  %s1147_s3 = inlined_call_operand.vmem [shape: f32[4,128], index: 3, kind: input, shape index: {}]   ;;  %s1148_s4 = inlined_call_operand.hbm [shape: f32[32,128], index: 4, kind: output, shape index: {}]  }
   0x1   :  { %11 = vsyncpa [#allocation3 + $0x1], 0  ;;  %s979_s15 = smov 0   ;;  %s981_s16 = smov 0  }
   0x2   :  { %s983_s17 = smov 0   ;;  %s985_s18 = smov 0  }
   0x3 LB: > { %s1000_s19 = sadd.s32 4294967295, %s949_s18   ;;  %s636_s20 = sadd.s32 4294967294, %s949_s18   ;;  %s949_s18 = sphi %s985_s18, %s1154_s18   ;;  %s945_s17 = sphi %s983_s17, %s1153_s17   ;;  %s941_s16 = sphi %s981_s16, %s1152_s16   ;;  %s937_s15 = sphi %s979_s15, %s1151_s15  }
   0x4   : > { %s1004_s21 = sadd.s32 1, %s949_s18   ;;  %s113_s22 = sadd.s32 1, %s945_s17 }
   0x5   : > { %s110_s23 = ssub.s32 %s949_s18, %s1004_s21  ;;  %p123_p0 = scmp.ne.s32.totalorder %s945_s17, %s941_s16 }
   0x6   : > { %p111_p1 = scmp.eq.s32.totalorder %s110_s23, 0  ;;  %p124_p2 = scmp.eq.s32.totalorder %s1000_s19, 1 }
   0x7   : > { %p129_p3 = scmp.ne.s32.totalorder %s941_s16, %s937_s15  ;;  %p130_p4 = scmp.eq.s32.totalorder %s636_s20, 1 }
   0x8   : > { %s1015_s24 = scalar_select %p111_p1, %s945_s17, %s113_s22  }
   0x9   : > { %p1017_p5 = por %p124_p2, %p123_p0  ;;  %p1021_p6 = por %p130_p4, %p129_p3 }
   0xa   : > { %p639_p7 = scmp.ge.s32.totalorder %s949_s18, 1  ;;  %p166_p8 = scmp.lt.s32.totalorder %s949_s18, 3 }
   0xc   : > { %p167_p9 = pnand %p639_p7, %p166_p8 }
   0xd   : > { %v201_v0 = vld [vmem:[%s1146_s2] sm:$0xff] (!%p167_p9)  ;;  %v202_v1 = vld [vmem:[%s1146_s2 + $0x8] sm:$0xff] (!%p167_p9)  ;;  %v203_v2 = vld [vmem:[%s1146_s2 + $0x10] sm:$0xff] (!%p167_p9)  ;;  %s641_s7 = sshll.u32 (!%p167_p9), %s1000_s19, 1  ;;  %vm303_vm0 = vcmask (!%p167_p9), 1043456   ;;  %vm296_vm1 = vcmask (!%p167_p9), 31744  }
   0xe   : > { %170 = sbr.rel (%p167_p9) target bundleno = 943 (0x3af), region = 36  ;;  %v778_v3 = vpack.c.bf16 (!%p167_p9), %v202_v1, %v201_v0  ;;  %v204_v4 = vld [vmem:[%s1146_s2 + $0x18] sm:$0xff] (!%p167_p9)  ;;  %p193_p10 = scmp.lt.s32.totalorder (!%p167_p9), %s641_s7, 3  ;;  %v205_v6 = vld [vmem:[%s1146_s2 + $0x20] sm:$0xff] (!%p167_p9)  ;;  %v206_v7 = vld [vmem:[%s1146_s2 + $0x28] sm:$0xff] (!%p167_p9) }
   0xf   : > { %v782_v5 = vpack.c.bf16 (!%p167_p9), %v204_v4, %v203_v2  ;;  %v786_v8 = vpack.c.bf16 (!%p167_p9), %v206_v7, %v205_v6  ;;  %v207_v9 = vld [vmem:[%s1146_s2 + $0x30] sm:$0xff] (!%p167_p9)  ;;  %v208_v10 = vld [vmem:[%s1146_s2 + $0x38] sm:$0xff] (!%p167_p9)  ;;  %v209_v13 = vld [vmem:[%s1146_s2 + $0x40] sm:$0xff] (!%p167_p9)  ;;  %s655_s12 = sshll.u32 (!%p167_p9), %s1000_s19, 8  ;;  %s951_s23 = smov (!%p167_p9), [#allocation2]  }
  0x10   : > { %779 = vmatprep.subr.bf16.mxu0 (!%p167_p9), %v778_v3  ;;  %v790_v12 = vpack.c.bf16 (!%p167_p9), %v208_v10, %v207_v9  ;;  %v210_v14 = vld [vmem:[%s1146_s2 + $0x48] sm:$0xff] (!%p167_p9)  ;;  %v211_v16 = vld [vmem:[%s1146_s2 + $0x50] sm:$0xff] (!%p167_p9)  ;;  %v212_v17 = vld [vmem:[%s1146_s2 + $0x58] sm:$0xff] (!%p167_p9)  ;;  %s1101_s20 = scalar_lea.hbm (!%p167_p9), %s1148_s4, %s655_s12  ;;  %s891_s27 = sshll.u32 (!%p167_p9), %s951_s23, 4  ;;  %s892_s27 = int_to_ptr.vmem [resolvable:$false] %s891_s27 }
  0x11   : > { %781 = vmatpush3.bf16.msra.mxu0 (!%p167_p9), %v778_v3  ;;  %v794_v15 = vpack.c.bf16 (!%p167_p9), %v210_v14, %v209_v13  ;;  %v798_v18 = vpack.c.bf16 (!%p167_p9), %v212_v17, %v211_v16  ;;  %v213_v19 = vld [vmem:[%s1146_s2 + $0x60] sm:$0xff] (!%p167_p9)  ;;  %v214_v20 = vld [vmem:[%s1146_s2 + $0x68] sm:$0xff] (!%p167_p9)  ;;  %v215_v22 = vld [vmem:[%s1146_s2 + $0x70] sm:$0xff] (!%p167_p9)  ;;  %s893_s28 = scalar_lea.vmem (!%p167_p9), %s892_s27, 512 }
  0x12   : > { %783 = vmatprep.subr.bf16.mxu0 (!%p167_p9), %v782_v5  ;;  %v802_v21 = vpack.c.bf16 (!%p167_p9), %v214_v20, %v213_v19  ;;  %v216_v23 = vld [vmem:[%s1146_s2 + $0x78] sm:$0xff] (!%p167_p9)  ;;  %v217_v26 = vld [vmem:[%s1147_s3] sm:$0xf] (!%p167_p9) }
  0x13   : > { %v806_v24 = vpack.c.bf16 (!%p167_p9), %v216_v23, %v215_v22  ;;  %733 = vmatprep.subr.msk.mxu1 (!%p167_p9), %vm303_vm0, %v217_v26  ;;  %v649_v45 = vld [vmem:[%s1145_s1] ss:$0 sm:$0xff] (!%p167_p9) }
  0x14   : > { %734 = vmatpush3.msk.msra.mxu1 (!%p167_p9), %vm303_vm0, %v217_v26 }
  0x15   : > { %s1156_s7 = smov (!%p193_p10, %s641_s7), 3  ;;  %785 = vmatpush3.bf16.msra.mxu0 %v782_v5  ;;  %811 = vmatprep.subr.bf16.mxu1 %v778_v3 }
  0x16   : > { %s642_s14 = sshll.u32 %s1156_s7, 3  ;;  %787 = vmatprep.subr.bf16.mxu0 %v786_v8 }
  0x17   : > { %s196_s30 = scalar_lea.vmem %s1144_s0, %s642_s14 }
  0x18   : > { %v1055_v11 = vld [vmem:[%s196_s30] sm:$0xff]  ;;  %v200_v25 = vld [vmem:[%s196_s30 + $0x8] sm:$0xff]  ;;  %s189_s30 = sand.u32 1, %s941_s16  }
  0x19   : > { %730 = vmatprep.mubr.f32.mxu0 %v1055_v11  ;;  %789 = vmatpush3.bf16.msra.mxu0 %v786_v8  ;;  %s640_s7 = sshll.u32 %s189_s30, 4  ;;  %s1103_s22 = scalar_lea.sflag [#allocation3], %s189_s30 }
  0x1a   : > { %791 = vmatprep.subr.bf16.mxu0 %v790_v12  ;;  %s191_s10 = scalar_lea.vmem [#allocation2], %s640_s7 }
  0x1b   : > { %s574_s11 = sshll.u32 %s191_s10, 4  ;;  %s1096_s11 = int_to_ptr.vmem [resolvable:$true] %s574_s11 }
  0x1c   : > { %s887_s19 = scalar_lea.vmem %s1096_s11, 256  ;;  %p894_p0 = scmp.lt.s32.totalorder %s1096_s11, %s892_s27 }
  0x1d   : > { %793 = vmatpush3.bf16.msra.mxu0 %v790_v12  ;;  %p888_p11 = scmp.ne.s32.totalorder %s1096_s11, %s887_s19  ;;  %p895_p1 = scmp.lt.s32.totalorder %s893_s28, %s887_s19 }
  0x1e   : > { %795 = vmatprep.subr.bf16.mxu0 %v794_v15 }
  0x1f   : > { %p889_p12 = pnand %p888_p11, %p1017_p5  ;;  %p896_p2 = por %p895_p1, %p894_p0 }
  0x21   : > { %797 = vmatpush3.bf16.msra.mxu0 %v794_v15  ;;  %p890_p13 = pneg %p889_p12 }
  0x22   : > { %799 = vmatprep.subr.bf16.mxu0 %v798_v18 }
  0x23   : > { %p897_p3 = pnand %p896_p2, %p890_p13 }
  0x25   : > { %801 = vmatpush3.bf16.msra.mxu0 %v798_v18 }
  0x26   : > { %803 = vmatprep.subr.bf16.mxu0 %v802_v21 }
  0x29   : > { %805 = vmatpush3.bf16.msra.mxu0 %v802_v21 }
  0x2a   : > { %807 = vmatprep.subr.bf16.mxu0 %v806_v24 }
  0x2d   : > { %809 = vmatpush3.bf16.msra.mxu0 %v806_v24 }
  0x2e   : > { %773 = vmatprep.subr.msk.mxu0 %vm303_vm0, %v217_v26 }
  0x30   : > { %731 = vmatmul.mubr.f32.vlgmr.msra.gmra.mrb[0].mxu0 %v200_v25 }
  0x31   : > { %774 = vmatpush3.msk.msra.mxu0 %vm303_vm0, %v217_v26 }
 0x103   : > { %v732_v27 = vpop.f32.mrb[0].mxu0 }
 0x104   : > { %v285_v28 = vpop.f32.mrb[1].mxu0  ;;  %v295_v30 = vmul.f32 0.03125, %v732_v27 }
 0x105   : > { %v294_v29 = vmul.f32 0.03125, %v285_v28 }
 0x107   : > { %735 = vmatprep.mubr.msk.f32.mxu1 %vm296_vm1, %v294_v29 }
 0x108   : > { %736 = vmatmul.mubr.msk.f32.vlgmr.msra.gmra.mrb[0].mxu1 %vm296_vm1, %v295_v30 }
 0x109   : > { %813 = vmatpush3.bf16.msra.mxu1 %v778_v3 }
 0x10a   : > { %815 = vmatprep.subr.bf16.mxu1 %v782_v5 }
 0x10d   : > { %817 = vmatpush3.bf16.msra.mxu1 %v782_v5 }
 0x10e   : > { %819 = vmatprep.subr.bf16.mxu1 %v786_v8 }
 0x111   : > { %821 = vmatpush3.bf16.msra.mxu1 %v786_v8 }
 0x112   : > { %823 = vmatprep.subr.bf16.mxu1 %v790_v12 }
 0x115   : > { %825 = vmatpush3.bf16.msra.mxu1 %v790_v12 }
 0x116   : > { %827 = vmatprep.subr.bf16.mxu1 %v794_v15 }
 0x119   : > { %829 = vmatpush3.bf16.msra.mxu1 %v794_v15 }
 0x11a   : > { %831 = vmatprep.subr.bf16.mxu1 %v798_v18 }
 0x11d   : > { %833 = vmatpush3.bf16.msra.mxu1 %v798_v18 }
 0x11e   : > { %835 = vmatprep.subr.bf16.mxu1 %v802_v21 }
 0x121   : > { %837 = vmatpush3.bf16.msra.mxu1 %v802_v21 }
 0x122   : > { %839 = vmatprep.subr.bf16.mxu1 %v806_v24 }
 0x125   : > { %841 = vmatpush3.bf16.msra.mxu1 %v806_v24 }
 0x1db   : > { %v737_v31 = vpop.f32.mrb[0].mxu1 }
 0x1dc   : > { %v383_v32 = vsub.f32 %v200_v25, %v737_v31  ;;  %v373_v33 = vpop.f32.mrb[1].mxu1 }
 0x1dd   : > { %v382_v34 = vsub.f32 %v1055_v11, %v373_v33 }
 0x1de   : > { %v385_v36 = vmul.f32 %v383_v32, %v383_v32 }
 0x1df   : > { %v384_v35 = vmul.f32 %v382_v34, %v382_v34 }
 0x1e1   : > { %770 = vmatprep.mubr.f32.mxu1 %v384_v35 }
 0x1e2   : > { %771 = vmatmul.mubr.f32.vlgmr.msra.gmra.mrb[2].mxu1 %v385_v36 }
 0x2b5   : > { %v772_v37 = vpop.f32.mrb[2].mxu1 }
 0x2b6   : > { %v462_v38 = vmul.f32 0.03125, %v772_v37  ;;  %v452_v39 = vpop.f32.mrb[3].mxu1 }
 0x2b7   : > { %v461_v40 = vmul.f32 0.03125, %v452_v39 }
 0x2b8   : > { %v464_v41 = vadd.f32 1e-05, %v462_v38 }
 0x2b9   : > { %v463_v42 = vadd.f32 1e-05, %v461_v40 }
 0x2bb   : > { %883 = vrsqrt.f32 %v463_v42 }
 0x2bc   : > { %885 = vrsqrt.f32 %v464_v41 }
 0x2c5   : > { %v884_v43 = vpop.eup %883 }
 0x2c6   : > { %v886_v44 = vpop.eup %885  ;;  %775 = vmatprep.mubr.msk.f32.mxu0 %vm296_vm1, %v884_v43 }
 0x2c7   : > { %776 = vmatmul.mubr.msk.f32.vlgmr.msra.gmra.mrb[2].mxu0 %vm296_vm1, %v886_v44 }
 0x39a   : > { %v777_v46 = vpop.f32.mrb[2].mxu0 }
 0x39b   : > { %v549_v47 = vmul.f32 %v777_v46, %v200_v25  ;;  %v539_v48 = vpop.f32.mrb[3].mxu0 }
 0x39c   : > { %v548_v49 = vmul.f32 %v539_v48, %v1055_v11 }
 0x39d   : > { %v557_v50 = vmul.f32 %v649_v45, %v549_v47 }
 0x39e   : > { %v556_v51 = vmul.f32 %v649_v45, %v548_v49 }
 0x39f   : > { %559 = vst [vmem:[%s191_s10 + $0x8] sm:$0xff] %v557_v50 }
 0x3a0   : > { %558 = vst [vmem:[%s191_s10] sm:$0xff] %v556_v51 }
 0x3a1   : > { %900 = shalt.err (!%p897_p3)
}
 0x3a2   : > { %s901_s29 = scalar_lea.hbm %s1101_s20, 256  ;;  %s905_s30 = scalar_lea.hbm %s1148_s4, 512 }
 0x3a3   : > { %p902_p4 = scmp.ne.s32.totalorder %s1101_s20, %s901_s29  ;;  %p906_p9 = scmp.lt.u32.totalorder %s1101_s20, %s1148_s4 }
 0x3a4   : > { %p907_p10 = scmp.lt.u32.totalorder %s905_s30, %s901_s29  ;;  %p909_p12 = scmp.lt.u32.totalorder %s901_s29, %s1101_s20 }
 0x3a5   : > { %p903_p7 = pnand %p902_p4, %p1017_p5 }
 0x3a6   : > { %p908_p11 = por %p907_p10, %p906_p9 }
 0x3a7   : > { %p904_p8 = pneg %p903_p7 }
 0x3a8   : > { %p910_p13 = por %p909_p12, %p908_p11 }
 0x3aa   : > { %p911_p0 = pnand %p910_p13, %p904_p8 }
 0x3ac   : > { %914 = shalt.err (!%p911_p0)
}
 0x3ad   : > { %s952_s9 = smov 128   ;;  %s953_s10 = smov 8  }
 0x3ae   : > { %842 = dma.vmem_to_hbm [thread:$0]  (%p1017_p5), %s1096_s11, 256, %s1101_s20, %s1103_s22, %s952_s9, %s952_s9, %s953_s10  }
 0x3af PF: > { %p848_p1 = scmp.ge.s32.totalorder %s949_s18, 2  ;;  %s589_s12 = sand.u32 1, %s937_s15  }
 0x3b0   : > { %s590_s13 = scalar_lea.sflag [#allocation3], %s589_s12 }
 0x3b1   : > { %p845_p2 = pnand %p848_p1, %p1021_p6 }
 0x3b3   : > { %932 = dma.done.wait (!%p845_p2), %s590_s13, 256  }
 0x3b4   : > { %934 = vsyncadd (!%p845_p2), %s590_s13, 4294967040  ;;  %p14_p3 = scmp.ge.s32.totalorder %s1004_s21, 4   ;;  %s1151_s15 = smov %s941_s16 }
 0x3b5   : > { %s1152_s16 = smov %s945_s17  ;;  %s1153_s17 = smov %s1015_s24 }
 0x3b6   : > { %s1154_s18 = smov %s1004_s21  ;;  %16 = sbr.rel (!%p14_p3) target bundleno = 3 (0x3), region = 71 }
 0x3bd   :  { %595 = vsyncpa [#allocation3], 1 }
 0x3be   :  { %597 = vsyncpa [#allocation3 + $0x1], 1 }

</bundles_post_ra>
